<compile_context>
chip_gen: v7x
topology: tpu7x:2x2x1
jax: 0.10.0
libtpu: 0.0.40
codegen_flags: <defaults>
</compile_context>

<pallas_src>
import jax
import jax.numpy as jnp
from jax.experimental import pallas as pl
from jax.experimental.pallas import tpu as pltpu


def _gaussian_ll_kernel(var_pred_ref, mean_pred_ref, var_ref, mean_ref, out_ref):
    # Load in native dtype, compute in f32 on vregs.
    vp = var_pred_ref[...].astype(jnp.float32)
    mp = mean_pred_ref[...].astype(jnp.float32)
    v = var_ref[...].astype(jnp.float32)
    m = mean_ref[...].astype(jnp.float32)

    rv = pl.reciprocal(vp)  # exact 1/var_pred
    diff = m - mp
    # log(vp) + ((m-mp)^2 + v)/vp - log(v) - 1  ==  (diff^2 + v)*rv - log(v*rv) - 1
    out_ref[...] = ((diff * diff + v) * rv - jnp.log(v * rv) - 1.0).astype(out_ref.dtype)


def gaussian_ll(var_pred, mean_pred, var, mean, *, target_block_bytes=512 * 1024):
    orig_shape = var_pred.shape
    dtype = var_pred.dtype
    total = var_pred.size
    itemsize = jnp.dtype(dtype).itemsize

    # Widest lane-dense slab width that divides the element count (copy-free
    # reshape, long unmasked stores); fall back to 128 + tail padding.
    slab_w = 128
    for w in (1024, 512, 256, 128):
        if total % w == 0:
            slab_w = w
            break

    rows = pl.cdiv(total, slab_w)

    # Block rows: ~target_block_bytes per buffer in the NATIVE dtype, rounded
    # to a 32-row sublane alignment (safe for f32 / bf16 / int8 packing).
    SUBLANE = 32
    budget_rows = max(
        SUBLANE, (target_block_bytes // (slab_w * itemsize)) // SUBLANE * SUBLANE
    )
    block_rows = int(rows) if rows <= budget_rows else int(budget_rows)

    rows_padded = pl.cdiv(rows, block_rows) * block_rows
    padded_total = rows_padded * slab_w
    grid = (rows_padded // block_rows,)

    def to_slab(x):
        flat = x.reshape(-1)  # native dtype — no upcast, no HBM round trip
        if padded_total != total:
            # pad with 1.0 so log()/reciprocal on the padding stays finite
            flat = jnp.pad(flat, (0, padded_total - total), constant_values=1.0)
        return flat.reshape(rows_padded, slab_w)

    slabs = [to_slab(x) for x in (var_pred, mean_pred, var, mean)]

    block = pl.BlockSpec((block_rows, slab_w), lambda i: (i, 0))

    out2 = pl.pallas_call(
        _gaussian_ll_kernel,
        out_shape=jax.ShapeDtypeStruct((rows_padded, slab_w), dtype),
        grid_spec=pltpu.PrefetchScalarGridSpec(
            num_scalar_prefetch=0,
            grid=grid,
            in_specs=[block] * 4,
            out_specs=block,
        ),
        compiler_params=pltpu.CompilerParams(
            dimension_semantics=("parallel",),
        ),
        cost_estimate=pl.CostEstimate(
            flops=6 * total,
            transcendentals=2 * total,
            bytes_accessed=5 * total * itemsize,
        ),
    )(*slabs)

    out = out2.reshape(-1)
    if padded_total != total:
        out = out[:total]
    return out.reshape(orig_shape)


def gaussian_ll_ref(var_pred, mean_pred, var, mean):
    return (
        jnp.log(var_pred)
        + ((mean - mean_pred) ** 2 + var) / var_pred
        - jnp.log(var)
        - 1.0
    )


if __name__ == "__main__":
    key = jax.random.PRNGKey(0)
    k1, k2, k3, k4 = jax.random.split(key, 4)

    # NCHW, matches the PyTorch module layout. Variances must be > 0.
    shape = (2, 4, 16, 16)
    var_pred = jnp.exp(jax.random.normal(k1, shape, dtype=jnp.float32) * 0.3)
    var = jnp.exp(jax.random.normal(k2, shape, dtype=jnp.float32) * 0.3)
    mean_pred = jax.random.normal(k3, shape, dtype=jnp.float32)
    mean = jax.random.normal(k4, shape, dtype=jnp.float32)

    out = jax.block_until_ready(gaussian_ll(var_pred, mean_pred, var, mean))
    ref = gaussian_ll_ref(var_pred, mean_pred, var, mean)
    assert out.shape == shape and out.dtype == var_pred.dtype
    assert jnp.allclose(out, ref, atol=1e-4, rtol=1e-4), float(
        jnp.max(jnp.abs(out - ref))
    )

    # Ragged size + bf16 path: exercises tail padding and in-kernel upcast.
    shape2 = (3, 5, 7, 11)
    vp2 = jnp.exp(jax.random.normal(k1, shape2) * 0.3).astype(jnp.bfloat16)
    v2 = jnp.exp(jax.random.normal(k2, shape2) * 0.3).astype(jnp.bfloat16)
    mp2 = jax.random.normal(k3, shape2).astype(jnp.bfloat16)
    m2 = jax.random.normal(k4, shape2).astype(jnp.bfloat16)
    out2 = jax.block_until_ready(gaussian_ll(vp2, mp2, v2, m2))
    ref2 = gaussian_ll_ref(
        vp2.astype(jnp.float32),
        mp2.astype(jnp.float32),
        v2.astype(jnp.float32),
        m2.astype(jnp.float32),
    )
    assert out2.shape == shape2 and out2.dtype == jnp.bfloat16
    assert jnp.allclose(out2.astype(jnp.float32), ref2, atol=5e-2, rtol=5e-2)

    print("KERNEL_OK")
</pallas_src>

<mosaic_0001>
module attributes {stable_mosaic.version = 11 : i64} {
  func.func @_gaussian_ll_kernel(%arg0: i32, %arg1: memref<2x1024xf32, #tpu.memory_space<vmem>>, %arg2: memref<2x1024xf32, #tpu.memory_space<vmem>>, %arg3: memref<2x1024xf32, #tpu.memory_space<vmem>>, %arg4: memref<2x1024xf32, #tpu.memory_space<vmem>>, %arg5: memref<2x1024xf32, #tpu.memory_space<vmem>>) attributes {dimension_semantics = [#tpu.dimension_semantics<parallel>], iteration_bounds = array<i64: 1>, scalar_prefetch = 0 : i64, scratch_operands = 0 : i64, tpu.core_type = #tpu.core_type<tc>, window_params = [{transform_indices = @transform_0, window_bounds = array<i64: 2, 1024>}, {transform_indices = @transform_1, window_bounds = array<i64: 2, 1024>}, {transform_indices = @transform_2, window_bounds = array<i64: 2, 1024>}, {transform_indices = @transform_3, window_bounds = array<i64: 2, 1024>}, {transform_indices = @transform_4, window_bounds = array<i64: 2, 1024>}]} {
    %c0 = arith.constant 0 : index
    %c0_0 = arith.constant 0 : index
    %0 = vector.load %arg1[%c0, %c0_0] : memref<2x1024xf32, #tpu.memory_space<vmem>>, vector<2x1024xf32>
    %c0_1 = arith.constant 0 : index
    %c0_2 = arith.constant 0 : index
    %1 = vector.load %arg2[%c0_1, %c0_2] : memref<2x1024xf32, #tpu.memory_space<vmem>>, vector<2x1024xf32>
    %c0_3 = arith.constant 0 : index
    %c0_4 = arith.constant 0 : index
    %2 = vector.load %arg3[%c0_3, %c0_4] : memref<2x1024xf32, #tpu.memory_space<vmem>>, vector<2x1024xf32>
    %c0_5 = arith.constant 0 : index
    %c0_6 = arith.constant 0 : index
    %3 = vector.load %arg4[%c0_5, %c0_6] : memref<2x1024xf32, #tpu.memory_space<vmem>>, vector<2x1024xf32>
    %4 = tpu.reciprocal %0 : vector<2x1024xf32> -> vector<2x1024xf32>
    %5 = arith.subf %3, %1 : vector<2x1024xf32>
    %6 = arith.mulf %5, %5 : vector<2x1024xf32>
    %7 = arith.addf %6, %2 : vector<2x1024xf32>
    %8 = arith.mulf %7, %4 : vector<2x1024xf32>
    %9 = arith.mulf %2, %4 : vector<2x1024xf32>
    %10 = math.log %9 : vector<2x1024xf32>
    %11 = arith.subf %8, %10 : vector<2x1024xf32>
    %cst = arith.constant 1.000000e+00 : f32
    %12 = vector.broadcast %cst : f32 to vector<2x1024xf32>
    %13 = arith.subf %11, %12 : vector<2x1024xf32>
    %c0_7 = arith.constant 0 : index
    %c0_8 = arith.constant 0 : index
    %14 = vector.load %arg5[%c0_7, %c0_8] : memref<2x1024xf32, #tpu.memory_space<vmem>>, vector<2x1024xf32>
    tpu.vector_store %arg5[%c0_7, %c0_8], %13 {strides = array<i32>} : memref<2x1024xf32, #tpu.memory_space<vmem>>, vector<2x1024xf32>,
    return
  }
  func.func @transform_0(%arg0: i32) -> (i32, i32) {
    %c0_i32 = arith.constant 0 : i32
    %c0_i32_0 = arith.constant 0 : i32
    return %arg0, %c0_i32 : i32, i32
  }
  func.func @transform_1(%arg0: i32) -> (i32, i32) {
    %c0_i32 = arith.constant 0 : i32
    %c0_i32_0 = arith.constant 0 : i32
    return %arg0, %c0_i32 : i32, i32
  }
  func.func @transform_2(%arg0: i32) -> (i32, i32) {
    %c0_i32 = arith.constant 0 : i32
    %c0_i32_0 = arith.constant 0 : i32
    return %arg0, %c0_i32 : i32, i32
  }
  func.func @transform_3(%arg0: i32) -> (i32, i32) {
    %c0_i32 = arith.constant 0 : i32
    %c0_i32_0 = arith.constant 0 : i32
    return %arg0, %c0_i32 : i32, i32
  }
  func.func @transform_4(%arg0: i32) -> (i32, i32) {
    %c0_i32 = arith.constant 0 : i32
    %c0_i32_0 = arith.constant 0 : i32
    return %arg0, %c0_i32 : i32, i32
  }
}

</mosaic_0001>

<bundles_post_ra>
// kernel: tpu_custom_call.1
= control target key start
LH: loop header
LB: loop body
LE: loop exit
PB: predicated region body
PF: predicated region fallthrough
CT: control target
= control target key end

     0   :  { %9 = vsyncpa [#allocation3], 0  ;;  %s335_s0 = inlined_call_operand.hbm [shape: f32[2,1024], index: 0, kind: input, shape index: {}]   ;;  %s336_s1 = inlined_call_operand.hbm [shape: f32[2,1024], index: 1, kind: input, shape index: {}]   ;;  %s337_s2 = inlined_call_operand.hbm [shape: f32[2,1024], index: 2, kind: input, shape index: {}]   ;;  %s338_s3 = inlined_call_operand.hbm [shape: f32[2,1024], index: 3, kind: input, shape index: {}]   ;;  %s339_s4 = inlined_call_operand.hbm [shape: f32[2,1024], index: 4, kind: output, shape index: {}]  }
   0x1   :  { %10 = vsyncpa [#allocation6], 0 }
   0x2   :  { %11 = vsyncpa [#allocation9], 0 }
   0x3   :  { %12 = vsyncpa [#allocation4], 0  ;;  %s245_s15 = smov [#allocation5]   ;;  %s246_s17 = smov [#allocation2]  }
   0x4   :  { %s29_s16 = sshll.u32 %s245_s15, 4  ;;  %s19_s18 = sshll.u32 %s246_s17, 4  ;;  %s30_s16 = int_to_ptr.vmem [resolvable:$true] %s29_s16  ;;  %s20_s18 = int_to_ptr.vmem [resolvable:$true] %s19_s18 }
   0x5   :  { %s127_s21 = scalar_lea.hbm %s336_s1, 256 }
   0x6   :  { %p128_p0 = scmp.ne.s32.totalorder %s336_s1, %s127_s21  ;;  %p131_p1 = scmp.lt.u32.totalorder %s127_s21, %s336_s1 }
   0x8   :  { %p133_p2 = pnand %p131_p1, %p128_p0 }
   0xa   :  { %136 = shalt.err (!%p133_p2)
}
   0xb   :  { %s137_s26 = scalar_lea.vmem %s30_s16, 256  ;;  %p142_p4 = scmp.lt.s32.totalorder %s30_s16, %s30_s16 }
   0xc   :  { %p138_p3 = scmp.ne.s32.totalorder %s30_s16, %s137_s26  ;;  %p143_p5 = scmp.lt.s32.totalorder %s137_s26, %s137_s26 }
   0xe   :  { %p144_p6 = por %p143_p5, %p142_p4 }
  0x10   :  { %p145_p7 = pnand %p144_p6, %p138_p3 }
  0x12   :  { %148 = shalt.err (!%p145_p7)
}
  0x13   :  { %32 = dma.hbm_to_vmem [thread:$0]  %s336_s1, 256, %s30_s16, [#allocation6]  }
  0x14   :  { %s149_s5 = scalar_lea.hbm %s335_s0, 256 }
  0x15   :  { %p150_p8 = scmp.ne.s32.totalorder %s335_s0, %s149_s5  ;;  %p153_p9 = scmp.lt.u32.totalorder %s149_s5, %s335_s0 }
  0x17   :  { %p155_p10 = pnand %p153_p9, %p150_p8 }
  0x19   :  { %158 = shalt.err (!%p155_p10)
}
  0x1a   :  { %s159_s10 = scalar_lea.vmem %s20_s18, 256  ;;  %p164_p12 = scmp.lt.s32.totalorder %s20_s18, %s20_s18 }
  0x1b   :  { %p160_p11 = scmp.ne.s32.totalorder %s20_s18, %s159_s10  ;;  %p165_p13 = scmp.lt.s32.totalorder %s159_s10, %s159_s10 }
  0x1d   :  { %p166_p0 = por %p165_p13, %p164_p12 }
  0x1f   :  { %p167_p1 = pnand %p166_p0, %p160_p11 }
  0x21   :  { %170 = shalt.err (!%p167_p1)
}
  0x22   :  { %22 = dma.hbm_to_vmem [thread:$0]  %s335_s0, 256, %s20_s18, [#allocation3]  }
  0x23   :  { %s247_s12 = smov [#allocation7]   ;;  %s248_s14 = smov [#allocation8]  }
  0x24   :  { %s39_s13 = sshll.u32 %s247_s12, 4  ;;  %s49_s15 = sshll.u32 %s248_s14, 4  ;;  %s40_s13 = int_to_ptr.vmem [resolvable:$true] %s39_s13  ;;  %s50_s15 = int_to_ptr.vmem [resolvable:$true] %s49_s15 }
  0x25   :  { %s171_s19 = scalar_lea.hbm %s337_s2, 256 }
  0x26   :  { %p172_p2 = scmp.ne.s32.totalorder %s337_s2, %s171_s19  ;;  %p175_p3 = scmp.lt.u32.totalorder %s171_s19, %s337_s2 }
  0x28   :  { %p177_p4 = pnand %p175_p3, %p172_p2 }
  0x2a   :  { %180 = shalt.err (!%p177_p4)
}
  0x2b   :  { %s181_s0 = scalar_lea.vmem %s40_s13, 256  ;;  %p186_p6 = scmp.lt.s32.totalorder %s40_s13, %s40_s13 }
  0x2c   :  { %p182_p5 = scmp.ne.s32.totalorder %s40_s13, %s181_s0  ;;  %p187_p7 = scmp.lt.s32.totalorder %s181_s0, %s181_s0 }
  0x2e   :  { %p188_p8 = por %p187_p7, %p186_p6 }
  0x30   :  { %p189_p9 = pnand %p188_p8, %p182_p5 }
  0x32   :  { %192 = shalt.err (!%p189_p9)
}
  0x33   :  { %42 = dma.hbm_to_vmem [thread:$0]  %s337_s2, 256, %s40_s13, [#allocation6]  }
  0x34   :  { %s193_s27 = scalar_lea.hbm %s338_s3, 256 }
  0x35   :  { %p194_p10 = scmp.ne.s32.totalorder %s338_s3, %s193_s27  ;;  %p197_p11 = scmp.lt.u32.totalorder %s193_s27, %s338_s3 }
  0x37   :  { %p199_p12 = pnand %p197_p11, %p194_p10 }
  0x39   :  { %202 = shalt.err (!%p199_p12)
}
  0x3a   :  { %s203_s6 = scalar_lea.vmem %s50_s15, 256  ;;  %p208_p0 = scmp.lt.s32.totalorder %s50_s15, %s50_s15 }
  0x3b   :  { %p204_p13 = scmp.ne.s32.totalorder %s50_s15, %s203_s6  ;;  %p209_p1 = scmp.lt.s32.totalorder %s203_s6, %s203_s6 }
  0x3d   :  { %p210_p2 = por %p209_p1, %p208_p0 }
  0x3f   :  { %p211_p3 = pnand %p210_p2, %p204_p13 }
  0x41   :  { %214 = shalt.err (!%p211_p3)
}
  0x42   :  { %52 = dma.hbm_to_vmem [thread:$0]  %s338_s3, 256, %s50_s15, [#allocation9]  }
  0x43   :  { %237 = dma.done.wait [#allocation3], 256  }
  0x44   :  { %238 = vsyncadd [#allocation3], 4294967040 }
  0x45   :  { %239 = dma.done.wait [#allocation6], 512  }
  0x46   :  { %240 = vsyncadd [#allocation6], 4294966784 }
  0x47   :  { %241 = dma.done.wait [#allocation9], 256  }
  0x48   :  { %242 = vsyncadd [#allocation9], 4294967040  ;;  %v65_v0 = vld [vmem:[#allocation2] sm:$0xff]  ;;  %v66_v1 = vld [vmem:[#allocation2 + $0x8] sm:$0xff]  ;;  %s249_s3 = smov [#allocation10]  }
  0x49   :  { %119 = vrcp.f32 %v65_v0  ;;  %v67_v2 = vld [vmem:[#allocation5] sm:$0xff]  ;;  %v69_v4 = vld [vmem:[#allocation7] sm:$0xff]  ;;  %v68_v5 = vld [vmem:[#allocation5 + $0x8] sm:$0xff]  ;;  %s101_s8 = sshll.u32 %s249_s3, 4  ;;  %s102_s8 = int_to_ptr.vmem [resolvable:$true] %s101_s8 }
  0x4a   :  { %121 = vrcp.f32 %v66_v1  ;;  %v71_v3 = vld [vmem:[#allocation8] sm:$0xff]  ;;  %v72_v6 = vld [vmem:[#allocation8 + $0x8] sm:$0xff]  ;;  %v70_v7 = vld [vmem:[#allocation7 + $0x8] sm:$0xff]  ;;  %s215_s9 = scalar_lea.vmem %s102_s8, 256  ;;  %p220_p5 = scmp.lt.s32.totalorder %s102_s8, %s102_s8 }
  0x4b   :  { %v75_v9 = vsub.f32 %v71_v3, %v67_v2  ;;  %v76_v12 = vsub.f32 %v72_v6, %v68_v5  ;;  %p216_p4 = scmp.ne.s32.totalorder %s102_s8, %s215_s9  ;;  %p221_p6 = scmp.lt.s32.totalorder %s215_s9, %s215_s9 }
  0x4d   :  { %v77_v14 = vmul.f32 %v75_v9, %v75_v9  ;;  %v78_v15 = vmul.f32 %v76_v12, %v76_v12  ;;  %p222_p7 = por %p221_p6, %p220_p5 }
  0x4f   :  { %v79_v16 = vadd.f32 %v77_v14, %v69_v4  ;;  %v80_v17 = vadd.f32 %v78_v15, %v70_v7  ;;  %p223_p8 = pnand %p222_p7, %p216_p4 }
  0x53   :  { %v120_v8 = vpop.eup %119 }
  0x54   :  { %v122_v10 = vpop.eup %121  ;;  %v83_v11 = vmul.f32 %v120_v8, %v69_v4  ;;  %v81_v18 = vmul.f32 %v120_v8, %v79_v16 }
  0x55   :  { %v84_v13 = vmul.f32 %v122_v10, %v70_v7  ;;  %v82_v20 = vmul.f32 %v122_v10, %v80_v17 }
  0x56   :  { %123 = vlog2.f32 %v83_v11 }
  0x57   :  { %125 = vlog2.f32 %v84_v13 }
  0x60   :  { %v124_v19 = vpop.eup %123 }
  0x61   :  { %v126_v21 = vpop.eup %125  ;;  %v86_v22 = vmul.f32 0.6931472, %v124_v19 }
  0x62   :  { %v88_v23 = vmul.f32 0.6931472, %v126_v21 }
  0x63   :  { %v89_v24 = vsub.f32 %v81_v18, %v86_v22 }
  0x64   :  { %v90_v25 = vsub.f32 %v82_v20, %v88_v23 }
  0x65   :  { %v112_v26 = vadd.f32 -1.0, %v89_v24 }
  0x66   :  { %v113_v27 = vadd.f32 -1.0, %v90_v25 }
  0x67   :  { %93 = vst [vmem:[#allocation10] sm:$0xff] %v112_v26 }
  0x68   :  { %94 = vst [vmem:[#allocation10 + $0x8] sm:$0xff] %v113_v27 }
  0x69   :  { %226 = shalt.err (!%p223_p8)
}
  0x6a   :  { %s227_s11 = scalar_lea.hbm %s339_s4, 256 }
  0x6b   :  { %p228_p9 = scmp.ne.s32.totalorder %s339_s4, %s227_s11  ;;  %p231_p10 = scmp.lt.u32.totalorder %s227_s11, %s339_s4 }
  0x6d   :  { %p233_p11 = pnand %p231_p10, %p228_p9 }
  0x6f   :  { %236 = shalt.err (!%p233_p11)
}
  0x70   :  { %104 = dma.vmem_to_hbm [thread:$0]  %s102_s8, 256, %s339_s4, [#allocation4]  }
  0x71   :  { %243 = dma.done.wait [#allocation4], 256  }
  0x72   :  { %244 = vsyncadd [#allocation4], 4294967040 }
  0x73   :  { %108 = vsyncpa [#allocation3], 1 }
  0x74   :  { %109 = vsyncpa [#allocation6], 1 }
  0x75   :  { %110 = vsyncpa [#allocation9], 1 }
  0x76   :  { %111 = vsyncpa [#allocation4], 1 }

</bundles_post_ra>
